<compile_context>
chip_gen: v7x
topology: tpu7x:2x2x1
jax: 0.10.0
libtpu: 0.0.40
codegen_flags: <defaults>
</compile_context>

<pallas_src>
import math

import jax
import jax.numpy as jnp
from jax.experimental import pallas as pl
from jax.experimental.pallas import tpu as pltpu

STATE_DIM = 11
N_ACTIONS = 3
H1 = 25                      # l1 / l3 output width
H2 = 50                      # l2 output width
HH = N_ACTIONS + H1          # fused head width: actor (3) + l3 (25) = 28

# Row offsets inside the packed parameter slab (all starts 8-aligned).
R_W1 = 0      # rows  0:11  cols 0:25    l1 weight (in, out)
R_B1 = 16     # row   16    cols 0:25    l1 bias
R_W2 = 24     # rows 24:49  cols 0:50    l2 weight
R_B2 = 56     # row   56    cols 0:50    l2 bias
R_WH = 64     # rows 64:114 cols 0:28    [actor_lin1 | l3] fused weight (cols 28:128 zero)
R_BH = 120    # row  120    cols 0:28    [actor_lin1 | l3] fused bias   (cols 28:128 zero)
R_WC = 128    # row  128    cols 3:28    critic_lin1 weight, aligned with l3 lanes in head
R_BC = 136    # row  136    col  0       critic_lin1 bias
SLAB_ROWS = 144
SLAB_COLS = 128


def actor_critic_kernel(x_ref, slab_ref, out_ref):
    # x_ref: (bt, STATE_DIM) already column-normalized in the wrapper.
    x = x_ref[...]

    # Static, sublane-aligned slices of the resident parameter slab.
    w1 = slab_ref[R_W1:R_W1 + STATE_DIM, 0:H1]
    b1 = slab_ref[R_B1:R_B1 + 1, 0:H1]
    w2 = slab_ref[R_W2:R_W2 + H1, 0:H2]
    b2 = slab_ref[R_B2:R_B2 + 1, 0:H2]
    wh = slab_ref[R_WH:R_WH + H2, :]                 # (50, 128) full-lane; cols 28:128 zero
    bh = slab_ref[R_BH:R_BH + 1, :]                  # (1, 128)  full-lane; cols 28:128 zero
    wc = slab_ref[R_WC:R_WC + 1, :]                  # (1, 128)  nonzero only in cols 3:28
    bc = slab_ref[R_BC:R_BC + 1, 0:1]                # (1, 1)

    # Shared trunk.
    y1 = jnp.maximum(jnp.dot(x, w1, preferred_element_type=jnp.float32) + b1, 0.0)
    y2 = jnp.maximum(jnp.dot(y1, w2, preferred_element_type=jnp.float32) + b2, 0.0)

    # Fused heads: one (bt,50) x (50,128) matmul -> lane-dense head.
    #   cols 0:3   actor_lin1 pre-tanh
    #   cols 3:28  l3 pre-relu          (detach in PyTorch is grad-only)
    #   cols 28:   exactly zero (slab invariant)
    head = jnp.dot(y2, wh, preferred_element_type=jnp.float32) + bh   # (bt, 128)

    # critic_lin1 (25 -> 1) on the VPU/XLU over the full vreg: relu of the actor /
    # zero lanes is masked out by wc's zero columns.
    c = jnp.maximum(head, 0.0)
    critic = jnp.tanh(jnp.sum(c * wc, axis=1, keepdims=True) + bc)    # (bt, 1)

    # Output slab via iota-select (no lane rotates, no padding vreg):
    # cols 0:3 = tanh(actor head), col 3 = critic, cols 4:127 = 0.
    col = jax.lax.broadcasted_iota(jnp.int32, head.shape, 1)
    means_full = jnp.tanh(head)                       # only cols 0:3 are kept
    out_ref[...] = jnp.where(col < N_ACTIONS, means_full,
                             jnp.where(col == N_ACTIONS, critic, 0.0))


def pack_params(params):
    """Pack all weights/biases into a single (SLAB_ROWS, SLAB_COLS) f32 slab.
    Do this once per parameter update, not per forward call.
    Keeps the zero-column invariant the kernel relies on (see header)."""
    (w1, b1, w2, b2, wa, ba, w3, b3, wc, bc, _logstds) = params
    slab = jnp.zeros((SLAB_ROWS, SLAB_COLS), jnp.float32)
    slab = slab.at[R_W1:R_W1 + STATE_DIM, 0:H1].set(w1)
    slab = slab.at[R_B1, 0:H1].set(b1[0])
    slab = slab.at[R_W2:R_W2 + H1, 0:H2].set(w2)
    slab = slab.at[R_B2, 0:H2].set(b2[0])
    slab = slab.at[R_WH:R_WH + H2, 0:N_ACTIONS].set(wa)
    slab = slab.at[R_WH:R_WH + H2, N_ACTIONS:HH].set(w3)
    slab = slab.at[R_BH, 0:N_ACTIONS].set(ba[0])
    slab = slab.at[R_BH, N_ACTIONS:HH].set(b3[0])
    slab = slab.at[R_WC, N_ACTIONS:HH].set(wc[:, 0])   # aligned with l3 lanes in head
    slab = slab.at[R_BC, 0].set(bc[0, 0])
    return slab


def _round_up(n, m):
    return ((n + m - 1) // m) * m


def actor_critic_forward(x, slab, logstds, *, batch_tile=256):
    """Returns (means, stds, critic) — the Normal actor-distribution parameters and
    the critic value, matching the PyTorch forward. Batch many rollout states into
    one call to amortize launch + slab-DMA cost."""
    B = x.shape[0]

    # F.normalize(x, dim=0) spans the whole batch -> cannot live inside a batch-
    # tiled kernel; hoisted here (exact sqrt-then-divide, matches PyTorch).
    norm = jnp.sqrt(jnp.sum(x * x, axis=0, keepdims=True))
    xn = x / jnp.maximum(norm, 1e-12)

    bt = min(batch_tile, _round_up(B, 8))            # tile rows, f32 sublane multiple
    bp = _round_up(B, bt)
    if bp != B:
        xn = jnp.pad(xn, ((0, bp - B), (0, 0)))

    out = pl.pallas_call(
        actor_critic_kernel,
        out_shape=jax.ShapeDtypeStruct((bp, SLAB_COLS), jnp.float32),
        grid_spec=pltpu.PrefetchScalarGridSpec(
            num_scalar_prefetch=0,
            grid=(bp // bt,),
            in_specs=[
                pl.BlockSpec((bt, STATE_DIM), lambda i: (i, 0)),
                # Constant block index -> slab fetched once, resident across tiles.
                pl.BlockSpec((SLAB_ROWS, SLAB_COLS), lambda i: (0, 0)),
            ],
            out_specs=pl.BlockSpec((bt, SLAB_COLS), lambda i: (i, 0)),
        ),
        compiler_params=pltpu.CompilerParams(
            dimension_semantics=("parallel",),        # megacore sharding on v7x
        ),
    )(xn, slab)

    means = out[:B, 0:N_ACTIONS]
    critic = out[:B, N_ACTIONS:N_ACTIONS + 1]
    # stds depends only on logstds — computed outside the kernel (cache per update).
    stds = jnp.clip(jnp.exp(logstds), 0.001, 50.0)
    return means, stds, critic


def _init_linear(key, fan_in, fan_out):
    """PyTorch nn.Linear default init (uniform +-1/sqrt(fan_in)); weight stored (in, out)."""
    kw, kb = jax.random.split(key)
    bound = 1.0 / math.sqrt(fan_in)
    w = jax.random.uniform(kw, (fan_in, fan_out), jnp.float32, -bound, bound)
    b = jax.random.uniform(kb, (1, fan_out), jnp.float32, -bound, bound)
    return w, b


def make_params(key):
    k1, k2, k3, k4, k5 = jax.random.split(key, 5)
    w1, b1 = _init_linear(k1, STATE_DIM, H1)        # l1
    w2, b2 = _init_linear(k2, H1, H2)               # l2
    wa, ba = _init_linear(k3, H2, N_ACTIONS)        # actor_lin1
    w3, b3 = _init_linear(k4, H2, H1)               # l3
    wc, bc = _init_linear(k5, H1, 1)                # critic_lin1
    logstds = jnp.full((1, N_ACTIONS), -0.6931, jnp.float32)
    return (w1, b1, w2, b2, wa, ba, w3, b3, wc, bc, logstds)


def reference_forward(x, params):
    """Pure-JAX reference reproducing the PyTorch semantics."""
    (w1, b1, w2, b2, wa, ba, w3, b3, wc, bc, logstds) = params
    col_norm = jnp.sqrt(jnp.sum(x * x, axis=0, keepdims=True))
    xn = x / jnp.maximum(col_norm, 1e-12)
    y = jax.nn.relu(xn @ w1 + b1)
    y = jax.nn.relu(y @ w2 + b2)
    means = jnp.tanh(y @ wa + ba)
    stds = jnp.clip(jnp.exp(logstds), 0.001, 50.0)
    c = jax.nn.relu(y @ w3 + b3)
    critic = jnp.tanh(c @ wc + bc)
    return means, stds, critic


if __name__ == "__main__":
    key = jax.random.PRNGKey(0)
    k_params, k_x = jax.random.split(key)

    params = make_params(k_params)
    slab = pack_params(params)
    logstds = params[-1]

    B = 32
    x = jax.random.normal(k_x, (B, STATE_DIM), jnp.float32)

    # batch_tile=8 -> grid=(4,): exercises the batch grid with the resident slab.
    means, stds, critic = jax.block_until_ready(
        actor_critic_forward(x, slab, logstds, batch_tile=8))

    # Sanity check against the pure-JAX reference.
    means_ref, stds_ref, critic_ref = reference_forward(x, params)
    assert jnp.allclose(means, means_ref, atol=1e-5), "means mismatch"
    assert jnp.allclose(stds, stds_ref, atol=1e-6), "stds mismatch"
    assert jnp.allclose(critic, critic_ref, atol=1e-5), "critic mismatch"

    print("KERNEL_OK")
</pallas_src>

<mosaic_0001>
module attributes {stable_mosaic.version = 11 : i64} {
  func.func @actor_critic_kernel(%arg0: i32, %arg1: memref<8x11xf32, #tpu.memory_space<vmem>>, %arg2: memref<144x128xf32, #tpu.memory_space<vmem>>, %arg3: memref<8x128xf32, #tpu.memory_space<vmem>>) attributes {dimension_semantics = [#tpu.dimension_semantics<parallel>], iteration_bounds = array<i64: 4>, scalar_prefetch = 0 : i64, scratch_operands = 0 : i64, tpu.core_type = #tpu.core_type<tc>, window_params = [{transform_indices = @transform_0, window_bounds = array<i64: 8, 11>}, {pipeline_mode = #tpu.pipeline_mode<synchronous>, transform_indices = @transform_1, window_bounds = array<i64: 144, 128>}, {transform_indices = @transform_2, window_bounds = array<i64: 8, 128>}]} {
    %c0 = arith.constant 0 : index
    %c0_0 = arith.constant 0 : index
    %0 = vector.load %arg1[%c0, %c0_0] : memref<8x11xf32, #tpu.memory_space<vmem>>, vector<8x11xf32>
    %c0_1 = arith.constant 0 : index
    %c0_2 = arith.constant 0 : index
    %1 = vector.load %arg2[%c0_1, %c0_2] : memref<144x128xf32, #tpu.memory_space<vmem>>, vector<11x25xf32>
    %c16 = arith.constant 16 : index
    %c0_3 = arith.constant 0 : index
    %2 = vector.load %arg2[%c16, %c0_3] : memref<144x128xf32, #tpu.memory_space<vmem>>, vector<1x25xf32>
    %c24 = arith.constant 24 : index
    %c0_4 = arith.constant 0 : index
    %3 = vector.load %arg2[%c24, %c0_4] : memref<144x128xf32, #tpu.memory_space<vmem>>, vector<25x50xf32>
    %c56 = arith.constant 56 : index
    %c0_5 = arith.constant 0 : index
    %4 = vector.load %arg2[%c56, %c0_5] : memref<144x128xf32, #tpu.memory_space<vmem>>, vector<1x50xf32>
    %c64 = arith.constant 64 : index
    %c0_6 = arith.constant 0 : index
    %5 = vector.load %arg2[%c64, %c0_6] : memref<144x128xf32, #tpu.memory_space<vmem>>, vector<50x128xf32>
    %c120 = arith.constant 120 : index
    %c0_7 = arith.constant 0 : index
    %6 = vector.load %arg2[%c120, %c0_7] : memref<144x128xf32, #tpu.memory_space<vmem>>, vector<1x128xf32>
    %c128 = arith.constant 128 : index
    %c0_8 = arith.constant 0 : index
    %7 = vector.load %arg2[%c128, %c0_8] : memref<144x128xf32, #tpu.memory_space<vmem>>, vector<1x128xf32>
    %c136 = arith.constant 136 : index
    %c0_9 = arith.constant 0 : index
    %8 = vector.load %arg2[%c136, %c0_9] : memref<144x128xf32, #tpu.memory_space<vmem>>, vector<1x1xf32>
    %cst = arith.constant dense<0.000000e+00> : vector<8x25xf32>
    %9 = tpu.matmul %0, %1, %cst {dimension_numbers = #tpu.dot_dimension_numbers<[1], [0], [0], [1], [0, 0, 1, 1], [], []>} : vector<8x11xf32>, vector<11x25xf32>, vector<8x25xf32> -> vector<8x25xf32>
    %10 = vector.broadcast %2 : vector<1x25xf32> to vector<8x25xf32>
    %11 = arith.addf %9, %10 : vector<8x25xf32>
    %cst_10 = arith.constant 0.000000e+00 : f32
    %12 = vector.broadcast %cst_10 : f32 to vector<8x25xf32>
    %13 = arith.maximumf %11, %12 : vector<8x25xf32>
    %cst_11 = arith.constant dense<0.000000e+00> : vector<8x50xf32>
    %14 = tpu.matmul %13, %3, %cst_11 {dimension_numbers = #tpu.dot_dimension_numbers<[1], [0], [0], [1], [0, 0, 1, 1], [], []>} : vector<8x25xf32>, vector<25x50xf32>, vector<8x50xf32> -> vector<8x50xf32>
    %15 = vector.broadcast %4 : vector<1x50xf32> to vector<8x50xf32>
    %16 = arith.addf %14, %15 : vector<8x50xf32>
    %cst_12 = arith.constant 0.000000e+00 : f32
    %17 = vector.broadcast %cst_12 : f32 to vector<8x50xf32>
    %18 = arith.maximumf %16, %17 : vector<8x50xf32>
    %cst_13 = arith.constant dense<0.000000e+00> : vector<8x128xf32>
    %19 = tpu.matmul %18, %5, %cst_13 {dimension_numbers = #tpu.dot_dimension_numbers<[1], [0], [0], [1], [0, 0, 1, 1], [], []>} : vector<8x50xf32>, vector<50x128xf32>, vector<8x128xf32> -> vector<8x128xf32>
    %20 = vector.broadcast %6 : vector<1x128xf32> to vector<8x128xf32>
    %21 = arith.addf %19, %20 : vector<8x128xf32>
    %cst_14 = arith.constant 0.000000e+00 : f32
    %22 = vector.broadcast %cst_14 : f32 to vector<8x128xf32>
    %23 = arith.maximumf %21, %22 : vector<8x128xf32>
    %24 = vector.broadcast %7 : vector<1x128xf32> to vector<8x128xf32>
    %25 = arith.mulf %23, %24 : vector<8x128xf32>
    %cst_15 = arith.constant dense<0.000000e+00> : vector<8xf32>
    %26 = vector.multi_reduction <add>, %25, %cst_15 [1] : vector<8x128xf32> to vector<8xf32>
    %27 = vector.shape_cast %26 : vector<8xf32> to vector<8x1xf32>
    %28 = vector.broadcast %8 : vector<1x1xf32> to vector<8x1xf32>
    %29 = arith.addf %27, %28 : vector<8x1xf32>
    %30 = math.tanh %29 : vector<8x1xf32>
    %31 = tpu.iota {dimensions = array<i32: 1>} : vector<8x128xi32>
    %32 = math.tanh %21 : vector<8x128xf32>
    %c3_i32 = arith.constant 3 : i32
    %33 = vector.broadcast %c3_i32 : i32 to vector<8x128xi32>
    %34 = arith.cmpi slt, %31, %33 : vector<8x128xi32>
    %c3_i32_16 = arith.constant 3 : i32
    %35 = vector.broadcast %c3_i32_16 : i32 to vector<8x128xi32>
    %36 = arith.cmpi eq, %31, %35 : vector<8x128xi32>
    %cst_17 = arith.constant 0.000000e+00 : f32
    %37 = vector.shape_cast %30 : vector<8x1xf32> to vector<8x1xf32>
    %38 = vector.broadcast %37 : vector<8x1xf32> to vector<8x128xf32>
    %39 = vector.broadcast %cst_17 : f32 to vector<8x128xf32>
    %40 = arith.select %36, %38, %39 : vector<8x128xi1>, vector<8x128xf32>
    %41 = arith.select %34, %32, %40 : vector<8x128xi1>, vector<8x128xf32>
    %c0_18 = arith.constant 0 : index
    %c0_19 = arith.constant 0 : index
    %42 = vector.load %arg3[%c0_18, %c0_19] : memref<8x128xf32, #tpu.memory_space<vmem>>, vector<8x128xf32>
    tpu.vector_store %arg3[%c0_18, %c0_19], %41 {strides = array<i32>} : memref<8x128xf32, #tpu.memory_space<vmem>>, vector<8x128xf32>,
    return
  }
  func.func @transform_0(%arg0: i32) -> (i32, i32) {
    %c0_i32 = arith.constant 0 : i32
    %c0_i32_0 = arith.constant 0 : i32
    return %arg0, %c0_i32 : i32, i32
  }
  func.func @transform_1(%arg0: i32) -> (i32, i32) {
    %c0_i32 = arith.constant 0 : i32
    %c0_i32_0 = arith.constant 0 : i32
    %c0_i32_1 = arith.constant 0 : i32
    return %c0_i32, %c0_i32_0 : i32, i32
  }
  func.func @transform_2(%arg0: i32) -> (i32, i32) {
    %c0_i32 = arith.constant 0 : i32
    %c0_i32_0 = arith.constant 0 : i32
    return %arg0, %c0_i32 : i32, i32
  }
}

</mosaic_0001>

<bundles_post_ra>
// kernel: tpu_custom_call.1
= control target key start
LH: loop header
LB: loop body
LE: loop exit
PB: predicated region body
PF: predicated region fallthrough
CT: control target
= control target key end

     0   :  { %7 = vsyncpa [#allocation3], 0  ;;  %s949_s0 = inlined_call_operand.vmem [shape: f32[32,11], index: 0, kind: input, shape index: {}]   ;;  %s950_s1 = inlined_call_operand.hbm [shape: f32[144,128], index: 1, kind: input, shape index: {}]   ;;  %s951_s2 = inlined_call_operand.hbm [shape: f32[32,128], index: 2, kind: output, shape index: {}]  }
   0x1   :  { %8 = vsyncpa [#allocation4], 0 }
   0x2   :  { %10 = vsyncpa [#allocation4 + $0x1], 0  ;;  %s809_s9 = smov 0   ;;  %s811_s10 = smov 0  }
   0x3   :  { %s813_s11 = smov 0   ;;  %s815_s12 = smov 0  }
   0x4 LB: > { %s830_s13 = sadd.s32 4294967295, %s783_s12   ;;  %s533_s14 = sadd.s32 4294967294, %s783_s12   ;;  %s783_s12 = sphi %s815_s12, %s967_s12   ;;  %s779_s11 = sphi %s813_s11, %s966_s11   ;;  %s775_s10 = sphi %s811_s10, %s965_s10   ;;  %s771_s9 = sphi %s809_s9, %s964_s9  }
   0x5   : > { %s834_s15 = sadd.s32 1, %s783_s12   ;;  %s70_s16 = sadd.s32 1, %s779_s11 }
   0x6   : > { %s67_s17 = ssub.s32 %s783_s12, %s834_s15  ;;  %p80_p0 = scmp.ne.s32.totalorder %s779_s11, %s775_s10 }
   0x7   : > { %p68_p1 = scmp.eq.s32.totalorder %s67_s17, 0  ;;  %p81_p2 = scmp.eq.s32.totalorder %s830_s13, 3 }
   0x8   : > { %p86_p3 = scmp.ne.s32.totalorder %s775_s10, %s771_s9  ;;  %p87_p4 = scmp.eq.s32.totalorder %s533_s14, 3 }
   0x9   : > { %s845_s18 = scalar_select %p68_p1, %s779_s11, %s70_s16  }
   0xa   : > { %p847_p5 = por %p81_p2, %p80_p0  ;;  %p851_p6 = por %p87_p4, %p86_p3 }
   0xb   : > { %p534_p7 = scmp.ge.s32.totalorder %s783_s12, 1  ;;  %p94_p8 = scmp.lt.s32.totalorder %s783_s12, 5 }
   0xc   : > { %s955_s19 = scalar_select %p847_p5, 1, 0 }
   0xd   : > { %s956_s20 = scalar_select %p851_p6, 1, 0 }
   0xe   : > { %p952_p9 = scmp.eq.s32.totalorder %s830_s13, 0  ;;  %p858_p10 = pnand %p534_p7, %p94_p8 }
   0xf   : > { %s785_s22 = smov [#allocation2]   ;;  %s689_s27 = scalar_lea.hbm %s950_s1, 2304 }
  0x10   : > { %s957_s21 = scalar_select %p858_p10, 1, 0 }
  0x11   : > { %s106_s23 = sshll.u32 %s785_s22, 4  ;;  %p633_p11 = pneg %p858_p10  ;;  %s107_s23 = int_to_ptr.vmem [resolvable:$true] %s106_s23 }
  0x12   : > { %p690_p13 = scmp.ne.s32.totalorder %s950_s1, %s689_s27  ;;  %p696_p3 = scmp.lt.u32.totalorder %s689_s27, %s950_s1 }
  0x13   : > { %p866_p12 = pnand %p952_p9, %p633_p11 }
  0x15   : > { %p691_p0 = pneg %p866_p12 }
  0x17   : > { %p692_p1 = pnand %p691_p0, %p690_p13 }
  0x19   : > { %p693_p2 = pneg %p692_p1 }
  0x1b   : > { %p698_p4 = pnand %p696_p3, %p693_p2 }
  0x1d   : > { %701 = shalt.err (!%p698_p4)
}
  0x1e   : > { %s702_s4 = scalar_lea.vmem %s107_s23, 2304  ;;  %p710_p9 = scmp.lt.s32.totalorder %s107_s23, %s107_s23 }
  0x1f   : > { %p703_p7 = scmp.ne.s32.totalorder %s107_s23, %s702_s4  ;;  %p711_p6 = scmp.lt.s32.totalorder %s702_s4, %s702_s4 }
  0x21   : > { %p705_p8 = pnand %p703_p7, %p691_p0  ;;  %p712_p5 = por %p711_p6, %p710_p9 }
  0x23   : > { %p706_p11 = pneg %p705_p8 }
  0x25   : > { %p713_p10 = pnand %p712_p5, %p706_p11 }
  0x27   : > { %716 = shalt.err (!%p713_p10)
}
  0x28   : > { %s786_s5 = smov 128   ;;  %s787_s6 = smov 8  }
  0x29   : > { %636 = dma.hbm_to_vmem [thread:$0]  (!%p866_p12), %s950_s1, 2304, %s107_s23, [#allocation3], %s786_s5, %s786_s5, %s787_s6  }
  0x2a   : > { %p959_p13 = scmp.ne.s32.totalorder %s957_s21, 0 }
  0x2b   : > { %p960_p1 = scmp.eq.s32.totalorder (!%p959_p13), %s830_s13, 0 }
  0x2c   : > { %129 = sbr.rel (%p959_p13) target bundleno = 1008 (0x3f0), region = 28 }
  0x33   : > { %762 = dma.done.wait (%p960_p1), [#allocation3], 2304   ;;  %p961_p0 = pmov %p960_p1 }
  0x34   : > { %v788_v0 = vmov 0.0|0.0   ;;  %p150_p5 = scmp.lt.s32.totalorder %s830_s13, 3  ;;  %vm789_vm0 = vmmov 0   ;;  %v790_v1 = vmov 0.0   ;;  %vm181_vm1 = vcmask 1042432   ;;  %v155_v2 = vld [vmem:[#allocation2] sm:$0xff] }
  0x35   : > { %764 = vsyncadd (%p961_p0), [#allocation3], 4294964992  ;;  %607 = vmatprep.subr.bf16.mxu1 %v788_v0  ;;  %618 = vmatprep.subr.bf16.mxu0 %v788_v0  ;;  %v156_v3 = vld [vmem:[#allocation2 + $0x8] sm:$0x7]  ;;  %vm791_vm2 = vmmov 1   ;;  %v158_v5 = vld [vmem:[#allocation2 + $0x18] sm:$0xff]  ;;  %v435_v44 = vlaneseq }
  0x36   : > { %576 = vmatprep.mubr.msk.f32.mxu1 %vm789_vm0, %v790_v1  ;;  %604 = vmatprep.mubr.msk.f32.mxu0 %vm789_vm0, %v790_v1  ;;  %s151_s14 = scalar_select %p150_p5, %s830_s13, 3  ;;  %vm609_vm3 = vmpackc.low %vm181_vm1, %vm791_vm2  ;;  %v608_v4 = vpack.c.bf16 %v156_v3, %v155_v2  ;;  %v159_v6 = vld [vmem:[#allocation2 + $0x20] sm:$0xff]  ;;  %vm177_vm4 = vcmask 89088   ;;  %vm264_vm5 = vcmask 1040384   ;;  %v160_v9 = vld [vmem:[#allocation2 + $0x28] sm:$0xff]  ;;  %vm260_vm7 = vcmask 203776  }
  0x37   : > { %v612_v8 = vpack.c.bf16 %v159_v6, %v158_v5  ;;  %vm616_vm6 = vmpackc.low %vm264_vm5, %vm791_vm2  ;;  %v161_v10 = vld [vmem:[#allocation2 + $0x30] sm:$0x1]  ;;  %v163_v12 = vld [vmem:[#allocation2 + $0x40] sm:$0xff]  ;;  %vm347_vm8 = vcmask 1041408   ;;  %vm343_vm9 = vcmask 408576   ;;  %v792_v39 = vmov 0  }
  0x38   : > { %s540_s16 = sshll.u32 %s151_s14, 3  ;;  %610 = vmatpush3.bf16.msk.msra.mxu1 %vm609_vm3, %v608_v4  ;;  %v615_v11 = vpack.c.bf16 %v161_v10, %v160_v9  ;;  %v164_v13 = vld [vmem:[#allocation2 + $0x48] sm:$0xff]  ;;  %v165_v14 = vld [vmem:[#allocation2 + $0x50] sm:$0xff]  ;;  %v166_v16 = vld [vmem:[#allocation2 + $0x58] sm:$0xff]  ;;  %684 = vset.pattern.permute.xlu0 %v792_v39  ;;  %s147_s23 = sand.u32 1, %s775_s10   ;;  %v436_v45 = vand.u32 127, %v435_v44 }
  0x39   : > { %s153_s22 = scalar_lea.vmem %s949_s0, %s540_s16  ;;  %611 = vmatprep.subr.bf16.mxu1 %v788_v0  ;;  %v619_v15 = vpack.c.bf16 %v164_v13, %v163_v12  ;;  %v622_v17 = vpack.c.bf16 %v166_v16, %v165_v14  ;;  %v541_v18 = vld [vmem:[#allocation2 + $0x10] ss:$0 sm:$0xff]  ;;  %v167_v23 = vld [vmem:[#allocation2 + $0x60] sm:$0xff]  ;;  %v168_v24 = vld [vmem:[#allocation2 + $0x68] sm:$0xff]  ;;  %s539_s24 = sshll.u32 %s147_s23, 3 }
  0x3a   : > { %v154_v7 = vld [vmem:[%s153_s22] sm:$0xff]  ;;  %v625_v25 = vpack.c.bf16 %v168_v24, %v167_v23  ;;  %v169_v26 = vld [vmem:[#allocation2 + $0x70] sm:$0x3]  ;;  %v544_v27 = vld [vmem:[#allocation2 + $0x38] ss:$0 sm:$0xff]  ;;  %vm439_vm10 = vcmp.eq.s32.totalorder %v436_v45, 3 }
  0x3b   : > { %577 = vmatmul.mubr.msk.f32.vlgmr.msra.gmra.mrb[0].mxu1 %vm177_vm4, %v154_v7  ;;  %620 = vmatpush3.bf16.msra.mxu0 %v619_v15  ;;  %v547_v32 = vld [vmem:[#allocation2 + $0x78] ss:$0 sm:$0xff]  ;;  %v550_v36 = vld [vmem:[#allocation2 + $0x80] ss:$0 sm:$0xff]  ;;  %v551_v40 = vld [vmem:[#allocation2 + $0x88] ss:$0 sm:$0xff] }
  0x3c   : > { %613 = vmatpush3.bf16.msra.mxu1 %v612_v8  ;;  %587 = vmatprep.mubr.msk.f32.mxu1 %vm789_vm0, %v790_v1  ;;  %s553_s25 = sshll.u32 %s830_s13, 7  ;;  %s149_s26 = scalar_lea.vmem [#allocation5], %s539_s24  ;;  %vm438_vm11 = vcmp.lt.s32.totalorder %v436_v45, 3 }
  0x3d   : > { %614 = vmatprep.subr.bf16.mxu1 %v788_v0  ;;  %621 = vmatprep.subr.bf16.mxu0 %v788_v0  ;;  %s462_s27 = sshll.u32 %s149_s26, 4  ;;  %s907_s30 = scalar_lea.hbm %s951_s2, %s553_s25  ;;  %s909_s27 = int_to_ptr.vmem [resolvable:$true] %s462_s27 }
  0x3e   : > { %s449_s3 = scalar_lea.sflag [#allocation4], %s147_s23  ;;  %s717_s13 = scalar_lea.vmem %s909_s27, 128 }
  0x3f   : > { %623 = vmatpush3.bf16.msra.mxu0 %v622_v17  ;;  %p718_p6 = scmp.ne.s32.totalorder %s909_s27, %s717_s13  ;;  %p962_p9 = scmp.ne.s32.totalorder %s955_s19, 0 }
  0x40   : > { %617 = vmatpush3.bf16.msk.msra.mxu1 %vm616_vm6, %v615_v11  ;;  %624 = vmatprep.subr.bf16.mxu0 %v788_v0  ;;  %s793_s4 = smov [#allocation5]  }
  0x41   : > { %p719_p10 = pnand %p718_p6, %p962_p9  ;;  %s721_s5 = sshll.u32 %s793_s4, 4  ;;  %s722_s5 = int_to_ptr.vmem [resolvable:$false] %s721_s5 }
  0x42   : > { %s723_s6 = scalar_lea.vmem %s722_s5, 256  ;;  %p724_p2 = scmp.lt.s32.totalorder %s909_s27, %s722_s5 }
  0x43   : > { %626 = vmatpush3.bf16.msra.mxu0 %v625_v25  ;;  %p720_p12 = pneg %p719_p10  ;;  %p725_p3 = scmp.lt.s32.totalorder %s723_s6, %s717_s13 }
  0x44   : > { %602 = vmatprep.subr.mxu0 %v790_v1 }
  0x45   : > { %p726_p4 = por %p725_p3, %p724_p2 }
  0x47   : > { %603 = vmatpush3.msk.msra.mxu0 %vm347_vm8, %v169_v26  ;;  %p727_p7 = pnand %p726_p4, %p720_p12 }
 0x10e   : > { %v251_v19 = vpop.f32.mrb[0].mxu1 }
 0x10f   : > { %v252_v20 = vadd.f32 %v541_v18, %v251_v19  ;;  %v578_v21 = vpop.f32.mrb[1].mxu1 }
 0x111   : > { %v255_v22 = vmax.f32 %v252_v20, 0.0 }
 0x113   : > { %588 = vmatmul.mubr.msk.f32.vlgmr.msra.gmra.mrb[2].mxu1 %vm260_vm7, %v255_v22 }
 0x1e6   : > { %v334_v28 = vpop.f32.mrb[2].mxu1 }
 0x1e7   : > { %v335_v29 = vadd.f32 %v544_v27, %v334_v28  ;;  %v589_v30 = vpop.f32.mrb[3].mxu1 }
 0x1e9   : > { %v338_v31 = vmax.f32 %v335_v29, 0.0 }
 0x1eb   : > { %605 = vmatmul.mubr.msk.f32.vlgmr.msra.gmra.mrb[0].mxu0 %vm343_vm9, %v338_v31 }
 0x2be   : > { %v417_v33 = vpop.f32.mrb[0].mxu0 }
 0x2bf   : > { %v418_v34 = vadd.f32 %v547_v32, %v417_v33  ;;  %v606_v35 = vpop.f32.mrb[1].mxu0 }
 0x2c1   : > { %v421_v37 = vmax.f32 %v418_v34, 0.0 }
 0x2c3   : > { %v426_v38 = vmul.f32 %v550_v36, %v421_v37 }
 0x2c5   : > { %427 = vadd.xlane.f32.xlu0 %v426_v38 }
 0x352   : > { %v428_v41 = vpop.xlane.xlu0 %427 }
 0x353   : > { %v433_v42 = vadd.f32 %v551_v40, %v428_v41 }
 0x355   : > { %685 = vtanh.f32 %v433_v42 }
 0x356   : > { %687 = vtanh.f32 %v418_v34 }
 0x35f   : > { %v686_v43 = vpop.eup %685 }
 0x360   : > { %442 = vperm.xlu0 %684, %v686_v43   ;;  %v688_v47 = vpop.eup %687 }
 0x3df   : > { %v443_v46 = vpop.permute.xlu0 %442 }
 0x3e0   : > { %v445_v48 = vsel %vm439_vm10, %v443_v46, 0.0 }
 0x3e1   : > { %v446_v49 = vsel %vm438_vm11, %v688_v47, %v445_v48 }
 0x3e2   : > { %447 = vst [vmem:[%s149_s26] sm:$0xff] %v446_v49 }
 0x3e3   : > { %730 = shalt.err (!%p727_p7)
}
 0x3e4   : > { %s731_s7 = scalar_lea.hbm %s907_s30, 128  ;;  %s735_s16 = scalar_lea.hbm %s951_s2, 512 }
 0x3e5   : > { %p732_p8 = scmp.ne.s32.totalorder %s907_s30, %s731_s7  ;;  %p736_p1 = scmp.lt.u32.totalorder %s907_s30, %s951_s2 }
 0x3e6   : > { %p737_p0 = scmp.lt.u32.totalorder %s735_s16, %s731_s7  ;;  %p739_p6 = scmp.lt.u32.totalorder %s731_s7, %s907_s30 }
 0x3e7   : > { %p733_p11 = pnand %p732_p8, %p962_p9 }
 0x3e8   : > { %p738_p5 = por %p737_p0, %p736_p1 }
 0x3e9   : > { %p734_p13 = pneg %p733_p11 }
 0x3ea   : > { %p740_p10 = por %p739_p6, %p738_p5 }
 0x3ec   : > { %p741_p12 = pnand %p740_p10, %p734_p13 }
 0x3ee   : > { %744 = shalt.err (!%p741_p12)
}
 0x3ef   : > { %631 = dma.vmem_to_hbm [thread:$0]  (%p962_p9), %s909_s27, 128, %s907_s30, %s449_s3  }
 0x3f0 PF: > { %p643_p2 = scmp.ge.s32.totalorder %s783_s12, 2  ;;  %s474_s22 = sand.u32 1, %s771_s9  }
 0x3f1   : > { %p963_p3 = scmp.ne.s32.totalorder %s956_s20, 0  ;;  %s475_s23 = scalar_lea.sflag [#allocation4], %s474_s22 }
 0x3f3   : > { %p638_p4 = pnand %p643_p2, %p963_p3 }
 0x3f5   : > { %766 = dma.done.wait (!%p638_p4), %s475_s23, 128  }
 0x3f6   : > { %768 = vsyncadd (!%p638_p4), %s475_s23, 4294967168  ;;  %p13_p7 = scmp.ge.s32.totalorder %s834_s15, 6   ;;  %s964_s9 = smov %s775_s10 }
 0x3f7   : > { %s965_s10 = smov %s779_s11  ;;  %s966_s11 = smov %s845_s18 }
 0x3f8   : > { %s967_s12 = smov %s834_s15  ;;  %15 = sbr.rel (!%p13_p7) target bundleno = 4 (0x4), region = 68 }
 0x3ff   :  { %480 = vsyncpa [#allocation3], 1 }
 0x400   :  { %482 = vsyncpa [#allocation3 + $0x1], 1 }
 0x401   :  { %483 = vsyncpa [#allocation4], 1 }
 0x402   :  { %485 = vsyncpa [#allocation4 + $0x1], 1 }

</bundles_post_ra>
